<compile_context>
chip_gen: v7x
topology: tpu7x:2x2x1
jax: 0.10.0
libtpu: 0.0.40
codegen_flags: <defaults>
</compile_context>

<pallas_src>
import jax
import jax.numpy as jnp
from jax import lax
from jax.experimental import pallas as pl
from jax.experimental.pallas import tpu as pltpu


_MAX_TILE_BYTES = 4 * 1024 * 1024     # per data buffer (x2 for double-buffering)
_SELECT_GATHER_MAX_C = 32             # VPU select gather up to this many classes
_N_PAR = 2                            # leading "parallel" axis (v7x megacore)


def _round_up(x, m):
    return (x + m - 1) // m * m


def _make_kernel(L, TL, D, C, steps, needs_mask):
    def kernel(labels_ref, data_ref, cen_ref, out_ref):
        p = pl.program_id(0)
        i = pl.program_id(1)

        @pl.when(i == 0)
        def _init():
            out_ref[...] = jnp.zeros_like(out_ref)

        labels = labels_ref[...]                          # (TL, 1) int32
        data = data_ref[...].astype(jnp.float32)          # (TL, D) f32 compute
        cen = cen_ref[...].astype(jnp.float32)            # (C, D), resident

        # center = cen[labels]; out-of-range labels -> all-zero row.
        if C <= _SELECT_GATHER_MAX_C:
            # Exact VPU gather: C compare/select/madd passes, no MXU and no
            # (TL, C) one-hot materialisation.
            center = jnp.zeros((TL, D), jnp.float32)
            for c in range(C):                            # static unroll, C small
                sel = jnp.where(labels == c, 1.0, 0.0)    # (TL, 1)
                center = center + sel * cen[c:c + 1, :]   # (TL, D)
        else:
            cls = lax.broadcasted_iota(jnp.int32, (TL, C), 1)
            onehot = (labels == cls).astype(jnp.float32)
            center = jnp.dot(onehot, cen,
                             preferred_element_type=jnp.float32,
                             precision=lax.Precision.HIGHEST)

        diff = data - center
        sq = diff * diff                                  # (TL, D) f32

        if needs_mask:
            # Zero rows past L (garbage in partial / duplicated edge tiles).
            row0 = (p * steps + i) * TL
            rows = row0 + lax.broadcasted_iota(jnp.int32, (TL, 1), 0)
            sq = jnp.where(rows < L, sq, 0.0)

        # vreg-shaped partial sum: fold row groups of 8 with pure VPU adds;
        # the expensive cross-lane reduce happens exactly once (wrapper).
        if TL == 8:
            partial = sq
        else:
            partial = jnp.sum(sq.reshape(TL // 8, 8, D), axis=0)   # (8, D)
        out_ref[...] += partial[None, :, :]

    return kernel


def adaptive_center_loss(data, labels, cen, *, tile_rows=512):
    """loss = sum((data - cen[labels])**2) / len(labels)  (PyTorch forward)."""
    L, D = data.shape
    C, Dc = cen.shape
    assert Dc == D, "cen and data feature dims must match"

    itemsize = jnp.dtype(data.dtype).itemsize
    rows_fit = max(8, (_MAX_TILE_BYTES // (D * itemsize)) // 8 * 8)
    TL = max(8, min(_round_up(tile_rows, 8), rows_fit, _round_up(L, 8)))

    n_blocks = -(-L // TL)                     # ceil(L / TL)
    n_par = max(1, min(_N_PAR, n_blocks))      # megacore split (v7x)
    steps = -(-n_blocks // n_par)              # inner (arbitrary) axis length
    needs_mask = (n_par * steps * TL) != L

    def row_block(p, i):
        # Clamp so duplicated tail iterations re-read the last valid block;
        # their contribution is masked to zero inside the kernel.
        return (jnp.minimum(p * steps + i, n_blocks - 1), 0)

    labels2d = labels.astype(jnp.int32).reshape(L, 1)

    flops = L * D * (3 * C + 3)
    bytes_accessed = (L * D * itemsize + L * 4
                      + C * D * jnp.dtype(cen.dtype).itemsize
                      + n_par * 8 * D * 4)

    partials = pl.pallas_call(
        _make_kernel(L, TL, D, C, steps, needs_mask),
        out_shape=jax.ShapeDtypeStruct((n_par, 8, D), jnp.float32),
        grid_spec=pltpu.PrefetchScalarGridSpec(
            num_scalar_prefetch=0,
            grid=(n_par, steps),
            in_specs=[
                pl.BlockSpec((TL, 1), row_block),             # labels (streamed)
                pl.BlockSpec((TL, D), row_block),             # data   (streamed)
                pl.BlockSpec((C, D), lambda p, i: (0, 0)),    # cen    (resident)
            ],
            out_specs=pl.BlockSpec((1, 8, D), lambda p, i: (p, 0, 0)),
        ),
        compiler_params=pltpu.CompilerParams(
            dimension_semantics=("parallel", "arbitrary")),
        cost_estimate=pl.CostEstimate(flops=flops, transcendentals=0,
                                      bytes_accessed=bytes_accessed),
    )(labels2d, data, cen)

    # Single cross-lane reduce + normalisation, done once outside the loop.
    return jnp.sum(partials) / jnp.float32(L)


def _reference_loss(data, labels, cen):
    # Pure-JAX reference mirroring the PyTorch forward (f32 math).
    L, _ = data.shape
    C = cen.shape[0]
    onehot = (labels[:, None] == jnp.arange(C)[None, :]).astype(jnp.float32)
    center = onehot @ cen.astype(jnp.float32)
    return jnp.sum((data.astype(jnp.float32) - center) ** 2) / L


# TODO(synk): compute_center / get_center are stateful host-side bookkeeping
# (sequential EMA update of the class centers) and are not part of forward().

if __name__ == "__main__":
    key = jax.random.PRNGKey(0)
    num_classes, dim, L = 4, 32, 8          # small shapes consistent w/ module
    k1, k2, k3, k4, k5 = jax.random.split(key, 5)

    data = jax.random.normal(k1, (L, dim), dtype=jnp.float32)
    labels = jax.random.randint(k2, (L,), 0, num_classes, dtype=jnp.int32)
    cen = jax.random.normal(k3, (num_classes, dim), dtype=jnp.float32)

    loss = jax.block_until_ready(adaptive_center_loss(data, labels, cen))
    ref = _reference_loss(data, labels, cen)
    assert jnp.allclose(loss, ref, rtol=1e-5, atol=1e-5), (loss, ref)

    # Odd length + bf16 stream + out-of-range label: exercises the tiled grid,
    # the parallel split, edge-tile masking and the zero-center path.
    L2 = 300
    data2 = jax.random.normal(k4, (L2, dim), dtype=jnp.float32).astype(jnp.bfloat16)
    labels2 = jax.random.randint(k5, (L2,), 0, num_classes, dtype=jnp.int32)
    labels2 = labels2.at[7].set(num_classes)          # out-of-range -> zero center
    loss2 = jax.block_until_ready(
        adaptive_center_loss(data2, labels2, cen, tile_rows=128))
    ref2 = _reference_loss(data2, labels2, cen)
    assert jnp.allclose(loss2, ref2, rtol=1e-4, atol=1e-4), (loss2, ref2)

    print("KERNEL_OK")
</pallas_src>

<mosaic_0001>
module attributes {stable_mosaic.version = 11 : i64} {
  func.func @kernel(%arg0: i32, %arg1: i32, %arg2: memref<8x1xi32, #tpu.memory_space<vmem>>, %arg3: memref<8x32xf32, #tpu.memory_space<vmem>>, %arg4: memref<4x32xf32, #tpu.memory_space<vmem>>, %arg5: memref<1x8x32xf32, #tpu.memory_space<vmem>>) attributes {dimension_semantics = [#tpu.dimension_semantics<parallel>, #tpu.dimension_semantics<arbitrary>], iteration_bounds = array<i64: 1, 1>, scalar_prefetch = 0 : i64, scratch_operands = 0 : i64, tpu.core_type = #tpu.core_type<tc>, window_params = [{transform_indices = @transform_0, window_bounds = array<i64: 8, 1>}, {transform_indices = @transform_1, window_bounds = array<i64: 8, 32>}, {pipeline_mode = #tpu.pipeline_mode<synchronous>, transform_indices = @transform_2, window_bounds = array<i64: 4, 32>}, {transform_indices = @transform_3, window_bounds = array<i64: 1, 8, 32>}]} {
    %c0_i32 = arith.constant 0 : i32
    %0 = arith.cmpi eq, %arg1, %c0_i32 : i32
    %1 = arith.extui %0 : i1 to i32
    %c0_i32_0 = arith.constant 0 : i32
    %2 = arith.cmpi ne, %1, %c0_i32_0 : i32
    scf.if %2 {
      %cst_21 = arith.constant 0.000000e+00 : f32
      %53 = vector.broadcast %cst_21 : f32 to vector<1x8x32xf32>
      %c0_22 = arith.constant 0 : index
      %c0_23 = arith.constant 0 : index
      %c0_24 = arith.constant 0 : index
      %54 = vector.load %arg5[%c0_22, %c0_23, %c0_24] : memref<1x8x32xf32, #tpu.memory_space<vmem>>, vector<1x8x32xf32>
      tpu.vector_store %arg5[%c0_22, %c0_23, %c0_24], %53 {strides = array<i32>} : memref<1x8x32xf32, #tpu.memory_space<vmem>>, vector<1x8x32xf32>,
    } else {
    }
    %c0 = arith.constant 0 : index
    %c0_1 = arith.constant 0 : index
    %3 = vector.load %arg2[%c0, %c0_1] : memref<8x1xi32, #tpu.memory_space<vmem>>, vector<8x1xi32>
    %c0_2 = arith.constant 0 : index
    %c0_3 = arith.constant 0 : index
    %4 = vector.load %arg3[%c0_2, %c0_3] : memref<8x32xf32, #tpu.memory_space<vmem>>, vector<8x32xf32>
    %c0_4 = arith.constant 0 : index
    %c0_5 = arith.constant 0 : index
    %5 = vector.load %arg4[%c0_4, %c0_5] : memref<4x32xf32, #tpu.memory_space<vmem>>, vector<4x32xf32>
    %cst = arith.constant 0.000000e+00 : f32
    %6 = vector.broadcast %cst : f32 to vector<8x32xf32>
    %c0_i32_6 = arith.constant 0 : i32
    %7 = vector.broadcast %c0_i32_6 : i32 to vector<8x1xi32>
    %8 = arith.cmpi eq, %3, %7 : vector<8x1xi32>
    %cst_7 = arith.constant 1.000000e+00 : f32
    %cst_8 = arith.constant 0.000000e+00 : f32
    %9 = vector.broadcast %cst_7 : f32 to vector<8x1xf32>
    %10 = vector.broadcast %cst_8 : f32 to vector<8x1xf32>
    %11 = arith.select %8, %9, %10 : vector<8x1xi1>, vector<8x1xf32>
    %12 = vector.extract_strided_slice %5 {offsets = [0, 0], sizes = [1, 32], strides = [1, 1]} : vector<4x32xf32> to vector<1x32xf32>
    %13 = vector.broadcast %11 : vector<8x1xf32> to vector<8x32xf32>
    %14 = vector.broadcast %12 : vector<1x32xf32> to vector<8x32xf32>
    %15 = arith.mulf %13, %14 : vector<8x32xf32>
    %16 = arith.addf %6, %15 : vector<8x32xf32>
    %c1_i32 = arith.constant 1 : i32
    %17 = vector.broadcast %c1_i32 : i32 to vector<8x1xi32>
    %18 = arith.cmpi eq, %3, %17 : vector<8x1xi32>
    %cst_9 = arith.constant 1.000000e+00 : f32
    %cst_10 = arith.constant 0.000000e+00 : f32
    %19 = vector.broadcast %cst_9 : f32 to vector<8x1xf32>
    %20 = vector.broadcast %cst_10 : f32 to vector<8x1xf32>
    %21 = arith.select %18, %19, %20 : vector<8x1xi1>, vector<8x1xf32>
    %22 = vector.extract_strided_slice %5 {offsets = [1, 0], sizes = [1, 32], strides = [1, 1]} : vector<4x32xf32> to vector<1x32xf32>
    %23 = vector.broadcast %21 : vector<8x1xf32> to vector<8x32xf32>
    %24 = vector.broadcast %22 : vector<1x32xf32> to vector<8x32xf32>
    %25 = arith.mulf %23, %24 : vector<8x32xf32>
    %26 = arith.addf %16, %25 : vector<8x32xf32>
    %c2_i32 = arith.constant 2 : i32
    %27 = vector.broadcast %c2_i32 : i32 to vector<8x1xi32>
    %28 = arith.cmpi eq, %3, %27 : vector<8x1xi32>
    %cst_11 = arith.constant 1.000000e+00 : f32
    %cst_12 = arith.constant 0.000000e+00 : f32
    %29 = vector.broadcast %cst_11 : f32 to vector<8x1xf32>
    %30 = vector.broadcast %cst_12 : f32 to vector<8x1xf32>
    %31 = arith.select %28, %29, %30 : vector<8x1xi1>, vector<8x1xf32>
    %32 = vector.extract_strided_slice %5 {offsets = [2, 0], sizes = [1, 32], strides = [1, 1]} : vector<4x32xf32> to vector<1x32xf32>
    %33 = vector.broadcast %31 : vector<8x1xf32> to vector<8x32xf32>
    %34 = vector.broadcast %32 : vector<1x32xf32> to vector<8x32xf32>
    %35 = arith.mulf %33, %34 : vector<8x32xf32>
    %36 = arith.addf %26, %35 : vector<8x32xf32>
    %c3_i32 = arith.constant 3 : i32
    %37 = vector.broadcast %c3_i32 : i32 to vector<8x1xi32>
    %38 = arith.cmpi eq, %3, %37 : vector<8x1xi32>
    %cst_13 = arith.constant 1.000000e+00 : f32
    %cst_14 = arith.constant 0.000000e+00 : f32
    %39 = vector.broadcast %cst_13 : f32 to vector<8x1xf32>
    %40 = vector.broadcast %cst_14 : f32 to vector<8x1xf32>
    %41 = arith.select %38, %39, %40 : vector<8x1xi1>, vector<8x1xf32>
    %42 = vector.extract_strided_slice %5 {offsets = [3, 0], sizes = [1, 32], strides = [1, 1]} : vector<4x32xf32> to vector<1x32xf32>
    %43 = vector.broadcast %41 : vector<8x1xf32> to vector<8x32xf32>
    %44 = vector.broadcast %42 : vector<1x32xf32> to vector<8x32xf32>
    %45 = arith.mulf %43, %44 : vector<8x32xf32>
    %46 = arith.addf %36, %45 : vector<8x32xf32>
    %47 = arith.subf %4, %46 : vector<8x32xf32>
    %48 = arith.mulf %47, %47 : vector<8x32xf32>
    %c0_15 = arith.constant 0 : index
    %c0_16 = arith.constant 0 : index
    %c0_17 = arith.constant 0 : index
    %49 = vector.load %arg5[%c0_15, %c0_16, %c0_17] : memref<1x8x32xf32, #tpu.memory_space<vmem>>, vector<1x8x32xf32>
    %50 = vector.shape_cast %48 : vector<8x32xf32> to vector<1x8x32xf32>
    %51 = arith.addf %49, %50 : vector<1x8x32xf32>
    %c0_18 = arith.constant 0 : index
    %c0_19 = arith.constant 0 : index
    %c0_20 = arith.constant 0 : index
    %52 = vector.load %arg5[%c0_18, %c0_19, %c0_20] : memref<1x8x32xf32, #tpu.memory_space<vmem>>, vector<1x8x32xf32>
    tpu.vector_store %arg5[%c0_18, %c0_19, %c0_20], %51 {strides = array<i32>} : memref<1x8x32xf32, #tpu.memory_space<vmem>>, vector<1x8x32xf32>,
    return
  }
  func.func @transform_0(%arg0: i32, %arg1: i32) -> (i32, i32) {
    %c1_i32 = arith.constant 1 : i32
    %0 = arith.muli %arg0, %c1_i32 : i32
    %1 = arith.addi %0, %arg1 : i32
    %c0_i32 = arith.constant 0 : i32
    %2 = arith.minsi %1, %c0_i32 : i32
    %c0_i32_0 = arith.constant 0 : i32
    %c0_i32_1 = arith.constant 0 : i32
    return %2, %c0_i32_0 : i32, i32
  }
  func.func @transform_1(%arg0: i32, %arg1: i32) -> (i32, i32) {
    %c1_i32 = arith.constant 1 : i32
    %0 = arith.muli %arg0, %c1_i32 : i32
    %1 = arith.addi %0, %arg1 : i32
    %c0_i32 = arith.constant 0 : i32
    %2 = arith.minsi %1, %c0_i32 : i32
    %c0_i32_0 = arith.constant 0 : i32
    %c0_i32_1 = arith.constant 0 : i32
    return %2, %c0_i32_0 : i32, i32
  }
  func.func @transform_2(%arg0: i32, %arg1: i32) -> (i32, i32) {
    %c0_i32 = arith.constant 0 : i32
    %c0_i32_0 = arith.constant 0 : i32
    %c0_i32_1 = arith.constant 0 : i32
    return %c0_i32, %c0_i32_0 : i32, i32
  }
  func.func @transform_3(%arg0: i32, %arg1: i32) -> (i32, i32, i32) {
    %c0_i32 = arith.constant 0 : i32
    %c0_i32_0 = arith.constant 0 : i32
    %c0_i32_1 = arith.constant 0 : i32
    return %arg0, %c0_i32, %c0_i32_0 : i32, i32, i32
  }
}

</mosaic_0001>

<bundles_post_ra>
// kernel: tpu_custom_call.1
= control target key start
LH: loop header
LB: loop body
LE: loop exit
PB: predicated region body
PF: predicated region fallthrough
CT: control target
= control target key end

     0   :  { %v196_v1 = vmov 0   ;;  %s242_s0 = inlined_call_operand.vmem [shape: s32[8,1], index: 0, kind: input, shape index: {}]   ;;  %s243_s1 = inlined_call_operand.vmem [shape: f32[8,32], index: 1, kind: input, shape index: {}]   ;;  %s244_s2 = inlined_call_operand.vmem [shape: f32[4,32], index: 2, kind: input, shape index: {}]   ;;  %s245_s3 = inlined_call_operand.hbm [shape: f32[1,8,32], index: 3, kind: output, shape index: {}]  }
   0x1   :  { %v75_v0 = vld [vmem:[%s242_s0] sm:$0xff]  ;;  %165 = vset.pattern.permute.xlu0 %v196_v1  ;;  %171 = vset.pattern.permute.xlu1 %v196_v1 }
   0x2   :  { %vm78_vm0 = vcmp.eq.s32.totalorder %v75_v0, 0  ;;  %vm91_vm1 = vcmp.eq.s32.totalorder %v75_v0, 1  ;;  %vm117_vm2 = vcmp.eq.s32.totalorder %v75_v0, 3 }
   0x3   :  { %8 = vsyncpa [#allocation3], 0  ;;  %v197_v2 = vmov 0.0   ;;  %vm104_vm3 = vcmp.eq.s32.totalorder %v75_v0, 2  ;;  %vm73_vm4 = vcmask 261120   ;;  %v85_v8 = vlaneseq  ;;  %v76_v30 = vld [vmem:[%s243_s1] sm:$0xff] }
   0x4   :  { %v79_v3 = vsel %vm78_vm0, 1.0, %v197_v2  ;;  %v92_v4 = vsel %vm91_vm1, 1.0, %v197_v2  ;;  %v118_v5 = vsel %vm117_vm2, 1.0, %v197_v2  ;;  %v105_v7 = vsel %vm104_vm3, 1.0, %v197_v2  ;;  %74 = vst.msk [vmem:[#allocation2] sm:$0xff] %vm73_vm4, %v197_v2 }
   0x5   :  { %v166_v6 = vpack.i.bf16 %v92_v4, %v79_v3  ;;  %121 = vperm.xlu1 %171, %v118_v5   ;;  %v86_v9 = vshrl.u32 %v85_v8, 7  ;;  %v77_v12 = vld [vmem:[%s244_s2] sm:$0xf]  ;;  %s198_s2 = smov [#allocation2]  }
   0x6   :  { %s142_s17 = sshll.u32 %s198_s2, 4  ;;  %s143_s17 = int_to_ptr.vmem [resolvable:$true] %s142_s17 }
   0x7   :  { %167 = vperm.xlu0 %165, %v166_v6   ;;  %v87_v10 = vsub.s32 0, %v86_v9  ;;  %v100_v11 = vsub.s32 1, %v86_v9  ;;  %v113_v13 = vsub.s32 2, %v86_v9  ;;  %v126_v14 = vsub.s32 3, %v86_v9  ;;  %s172_s18 = scalar_lea.vmem %s143_s17, 128  ;;  %p177_p1 = scmp.lt.s32.totalorder %s143_s17, %s143_s17 }
   0x8   :  { %p173_p0 = scmp.ne.s32.totalorder %s143_s17, %s172_s18  ;;  %p178_p2 = scmp.lt.s32.totalorder %s172_s18, %s172_s18 }
   0x9   :  { %v88_v15 = vrot.slane %v77_v12, %v87_v10  ;;  %v101_v16 = vrot.slane %v77_v12, %v100_v11  ;;  %v114_v20 = vrot.slane %v77_v12, %v113_v13  ;;  %v127_v21 = vrot.slane %v77_v12, %v126_v14 }
   0xa   :  { %p179_p3 = por %p178_p2, %p177_p1 }
   0xb   :  { %108 = vperm.xlu0 %165, %v105_v7   ;;  %v132_v33 = vld [vmem:[#allocation2] sm:$0xff] }
   0xc   :  { %p180_p4 = pnand %p179_p3, %p173_p0 }
  0x84   :  { %v122_v22 = vpop.permute.xlu1 %121 }
  0x85   :  { %v128_v28 = vmul.f32 %v127_v21, %v122_v22 }
  0x86   :  { %v168_v17 = vpop.permute.xlu0 %167 }
  0x87   :  { %v170_v18 = vunpack.i.h.bf16 %v168_v17  ;;  %v169_v19 = vunpack.i.l.bf16 %v168_v17 }
  0x89   :  { %v102_v23 = vmul.f32 %v170_v18, %v101_v16  ;;  %v89_v24 = vmul.f32 %v169_v19, %v88_v15 }
  0x8a   :  { %v109_v25 = vpop.permute.xlu0 %108 }
  0x8b   :  { %v103_v26 = vadd.f32 %v102_v23, %v89_v24  ;;  %v115_v27 = vmul.f32 %v114_v20, %v109_v25 }
  0x8d   :  { %v116_v29 = vadd.f32 %v115_v27, %v103_v26 }
  0x8f   :  { %v129_v31 = vadd.f32 %v128_v28, %v116_v29 }
  0x91   :  { %v130_v32 = vsub.f32 %v76_v30, %v129_v31 }
  0x93   :  { %v131_v34 = vmul.f32 %v130_v32, %v130_v32 }
  0x95   :  { %v133_v35 = vadd.f32 %v132_v33, %v131_v34 }
  0x97   :  { %135 = vst.msk [vmem:[#allocation2] sm:$0xff] %vm73_vm4, %v133_v35 }
  0x98   :  { %183 = shalt.err (!%p180_p4)
}
  0x99   :  { %s184_s1 = scalar_lea.hbm %s245_s3, 128 }
  0x9a   :  { %p185_p5 = scmp.ne.s32.totalorder %s245_s3, %s184_s1  ;;  %p188_p6 = scmp.lt.u32.totalorder %s184_s1, %s245_s3 }
  0x9c   :  { %p190_p7 = pnand %p188_p6, %p185_p5 }
  0x9e   :  { %193 = shalt.err (!%p190_p7)
}
  0x9f   :  { %145 = dma.vmem_to_hbm [thread:$0]  %s143_s17, 128, %s245_s3, [#allocation3]  }
  0xa0   :  { %194 = dma.done.wait [#allocation3], 128  }
  0xa1   :  { %195 = vsyncadd [#allocation3], 4294967168 }
  0xa2   :  { %149 = vsyncpa [#allocation3], 1 }

</bundles_post_ra>
